<compile_context>
chip_gen: v7x
topology: tpu7x:2x2x1
jax: 0.10.0
libtpu: 0.0.40
codegen_flags: <defaults>
</compile_context>

<pallas_src>
import jax
import jax.numpy as jnp
from jax.experimental import pallas as pl
from jax.experimental.pallas import tpu as pltpu

CLIPMIN = 1e-5
CLIPMAX = 1e4


def _mix2_affine_quant_kernel(x_ref, nbits_ref, out_ref):
    tr = x_ref.shape[0]
    x = x_ref[...].astype(jnp.float32)                         # (TR, C)

    # Per-row bit widths. Either a per-tile (TR, 1) block or a VMEM-resident
    # (rows_p, 1) column we slice with the grid index (decided at trace time).
    if nbits_ref.shape[0] == tr:
        nb = nbits_ref[...].astype(jnp.float32)                # (TR, 1)
    else:
        off = pl.multiple_of(pl.program_id(0) * tr, tr)
        nb = nbits_ref[pl.ds(off, tr), :].astype(jnp.float32)  # (TR, 1)

    # Per-row quantization parameters: all (TR, 1), negligible cost
    # (exp2 -> EUP slot; min/max -> XLU; a handful of column-wide VALU ops).
    qmax = jnp.exp2(nb) - 1.0                                  # q_min == 0
    xmin = jnp.min(x, axis=-1, keepdims=True)
    xmax = jnp.max(x, axis=-1, keepdims=True)
    scale = jnp.clip((xmax - xmin) / qmax, CLIPMIN, CLIPMAX)
    inv_scale = 1.0 / scale            # exact per-row reciprocal (NOT approx)
    round_zp = jnp.round(jnp.clip(-xmin / scale, -CLIPMAX, CLIPMAX))

    # Fold the zero point into the clip bounds (exactly equivalent: round_zp and
    # qmax are integer-valued f32 well inside the mantissa range):
    #   (clip(round(x/scale)+zp, 0, qmax) - zp) * scale
    #     == clip(round(x*inv_scale), -zp, qmax-zp) * scale
    lo = -round_zp                                             # (TR, 1)
    hi = qmax - round_zp                                       # (TR, 1)
    x_dq = jnp.clip(jnp.round(x * inv_scale), lo, hi) * scale
    out_ref[...] = x_dq.astype(out_ref.dtype)


def _choose_row_tile(rows, cols, itemsize, sub):
    # ~4 MiB per (row_tile, cols) block: streaming kernels sit near the HBM
    # roofline at this size, and 2x(in)+2x(out) buffers + f32 temporaries stay
    # comfortably under v7x's 64 MiB VMEM.
    target_bytes = 4 * 1024 * 1024
    rt = max(sub, (target_bytes // max(1, cols * itemsize)) // sub * sub)
    # Keep at least 2 grid steps whenever possible (double-buffering; the two
    # v7x TensorCores share the "parallel" grid axis).
    cap = max(sub, (rows // 2) // sub * sub)
    return min(rt, cap)


def mix2_affine_quantize(x, mix2_nbits, *, row_tile=None,
                         vmem_limit_bytes=48 * 1024 * 1024):
    """x: (rows, cols) float array. mix2_nbits: (rows,) per-row bit widths."""
    rows, cols = x.shape
    itemsize = jnp.dtype(x.dtype).itemsize
    sub = max(8, 32 // itemsize)        # sublane packing: 8 f32 / 16 bf16 / 32 i8

    if row_tile is None:
        row_tile = _choose_row_tile(rows, cols, itemsize, sub)
    else:
        row_tile = max(sub, (row_tile // sub) * sub)

    num_tiles = pl.cdiv(rows, row_tile)
    rows_p = num_tiles * row_tile       # padded row count (only nbits is padded)

    # Per-row bit widths: the .unsqueeze(-1) of the module. Tiny (rows, 1)
    # column; padding it to a whole number of tiles is negligible.
    nbits = mix2_nbits.reshape(rows, 1).astype(jnp.float32)
    if rows_p != rows:
        nbits = jnp.pad(nbits, ((0, rows_p - rows), (0, 0)), constant_values=8.0)

    grid = (num_tiles,)

    # Small nbits column: keep it resident in VMEM (constant index_map -> single
    # fetch) instead of issuing a tiny lane-masked DMA every grid step.
    if rows_p <= 2048:
        nbits_spec = pl.BlockSpec((rows_p, 1), lambda i: (0, 0))
    else:
        nbits_spec = pl.BlockSpec((row_tile, 1), lambda i: (i, 0))

    cost = pl.CostEstimate(
        flops=6 * rows * cols,
        transcendentals=rows,
        bytes_accessed=2 * rows * cols * itemsize + rows * 4,
    )

    # Ragged rows: cdiv grid, partial last block (OOB input rows compute
    # garbage, their stores are masked off).  Ragged cols: block last dim equals
    # the full array dim, Mosaic masks loads/stores and reduction padding lanes.
    # TODO(synk): on v5e, sweep pipeline_mode=pl.Buffered(3) on the x input spec
    # if the bundle shows exposed DMA waits.
    out = pl.pallas_call(
        _mix2_affine_quant_kernel,
        out_shape=jax.ShapeDtypeStruct((rows, cols), x.dtype),
        grid_spec=pltpu.PrefetchScalarGridSpec(
            num_scalar_prefetch=0,
            grid=grid,
            in_specs=[
                pl.BlockSpec((row_tile, cols), lambda i: (i, 0)),
                nbits_spec,
            ],
            out_specs=pl.BlockSpec((row_tile, cols), lambda i: (i, 0)),
        ),
        compiler_params=pltpu.CompilerParams(
            dimension_semantics=("parallel",),
            vmem_limit_bytes=vmem_limit_bytes,
        ),
        cost_estimate=cost,
    )(x, nbits)
    return out


def _reference(x, mix2_nbits):
    """Pure-JAX reference mirroring the PyTorch forward (asymmetric path)."""
    nb = mix2_nbits.reshape(-1, 1).astype(jnp.float32)
    qmax = 2.0 ** nb - 1.0
    xmin = jnp.min(x, axis=-1, keepdims=True)
    xmax = jnp.max(x, axis=-1, keepdims=True)
    scale = jnp.clip((xmax - xmin) / qmax, CLIPMIN, CLIPMAX)
    zp = jnp.round(jnp.clip(-xmin / scale, -CLIPMAX, CLIPMAX))
    x_int = jnp.clip(jnp.round(x / scale) + zp, 0.0, qmax)
    return (x_int - zp) * scale, scale


def _check(out, ref, scale):
    # The kernel uses an exact per-row reciprocal multiply instead of a
    # full-tile divide; at exact .5 rounding ties this can differ from the
    # divide-based reference by (at most) one quantization step on isolated
    # elements. Allow that, but require it to be rare.
    err = jnp.abs(out - ref)
    assert bool(jnp.all(err <= scale * 1.001 + 1e-5)), "mismatch vs reference"
    frac = float(jnp.mean((err > 1e-4).astype(jnp.float32)))
    assert frac < 0.01, f"too many rounding-tie mismatches: {frac}"


# TODO(synk): lwc (learnable clipping factors), symmetric, and group_size code
# paths of the module are not exercised by the default config and are omitted.

if __name__ == "__main__":
    key = jax.random.PRNGKey(0)
    kx, kb, kx2 = jax.random.split(key, 3)

    # Case 1: aligned shapes (rows multiple of 8, cols multiple of 128).
    rows, cols = 16, 128
    x = jax.random.normal(kx, (rows, cols), dtype=jnp.float32)
    mix2_nbits = (2.0 + (jnp.arange(rows, dtype=jnp.float32) % 7)).astype(jnp.float32)

    out = jax.block_until_ready(mix2_affine_quantize(x, mix2_nbits))
    ref, scale = _reference(x, mix2_nbits)
    assert out.shape == x.shape and out.dtype == x.dtype
    _check(out, ref, scale)

    # Case 2: ragged shapes exercising the partial-row-block and the
    # non-128-aligned-column (masked load/store + masked reduction) paths.
    rows2, cols2 = 20, 200
    x2 = jax.random.normal(kx2, (rows2, cols2), dtype=jnp.float32)
    mix2_nbits2 = (2.0 + (jnp.arange(rows2, dtype=jnp.float32) % 7)).astype(jnp.float32)

    out2 = jax.block_until_ready(mix2_affine_quantize(x2, mix2_nbits2))
    ref2, scale2 = _reference(x2, mix2_nbits2)
    assert out2.shape == x2.shape and out2.dtype == x2.dtype
    _check(out2, ref2, scale2)

    print("KERNEL_OK")
</pallas_src>

<mosaic_0001>
module attributes {stable_mosaic.version = 11 : i64} {
  func.func @_mix2_affine_quant_kernel(%arg0: i32, %arg1: memref<8x128xf32, #tpu.memory_space<vmem>>, %arg2: memref<16x1xf32, #tpu.memory_space<vmem>>, %arg3: memref<8x128xf32, #tpu.memory_space<vmem>>) attributes {dimension_semantics = [#tpu.dimension_semantics<parallel>], iteration_bounds = array<i64: 2>, scalar_prefetch = 0 : i64, scratch_operands = 0 : i64, tpu.core_type = #tpu.core_type<tc>, window_params = [{transform_indices = @transform_0, window_bounds = array<i64: 8, 128>}, {pipeline_mode = #tpu.pipeline_mode<synchronous>, transform_indices = @transform_1, window_bounds = array<i64: 16, 1>}, {transform_indices = @transform_2, window_bounds = array<i64: 8, 128>}]} {
    %c0 = arith.constant 0 : index
    %c0_0 = arith.constant 0 : index
    %0 = vector.load %arg1[%c0, %c0_0] : memref<8x128xf32, #tpu.memory_space<vmem>>, vector<8x128xf32>
    %c8_i32 = arith.constant 8 : i32
    %1 = arith.muli %arg0, %c8_i32 : i32
    %2 = tpu.assume_multiple %1, 8 : i32
    %3 = arith.index_cast %2 : i32 to index
    %c0_1 = arith.constant 0 : index
    %4 = vector.load %arg2[%3, %c0_1] : memref<16x1xf32, #tpu.memory_space<vmem>>, vector<8x1xf32>
    %5 = math.exp2 %4 : vector<8x1xf32>
    %cst = arith.constant 1.000000e+00 : f32
    %6 = vector.broadcast %cst : f32 to vector<8x1xf32>
    %7 = arith.subf %5, %6 : vector<8x1xf32>
    %cst_2 = arith.constant dense<0x7F800000> : vector<8xf32>
    %8 = vector.multi_reduction <minimumf>, %0, %cst_2 [1] : vector<8x128xf32> to vector<8xf32>
    %9 = vector.shape_cast %8 : vector<8xf32> to vector<8x1xf32>
    %cst_3 = arith.constant dense<0xFF800000> : vector<8xf32>
    %10 = vector.multi_reduction <maximumf>, %0, %cst_3 [1] : vector<8x128xf32> to vector<8xf32>
    %11 = vector.shape_cast %10 : vector<8xf32> to vector<8x1xf32>
    %12 = arith.subf %11, %9 : vector<8x1xf32>
    %13 = arith.divf %12, %7 : vector<8x1xf32>
    %cst_4 = arith.constant 9.99999974E-6 : f32
    %cst_5 = arith.constant 1.000000e+04 : f32
    %14 = vector.broadcast %cst_4 : f32 to vector<8x1xf32>
    %15 = arith.maximumf %14, %13 : vector<8x1xf32>
    %16 = vector.broadcast %cst_5 : f32 to vector<8x1xf32>
    %17 = arith.minimumf %16, %15 : vector<8x1xf32>
    %cst_6 = arith.constant 1.000000e+00 : f32
    %18 = vector.broadcast %cst_6 : f32 to vector<8x1xf32>
    %19 = arith.divf %18, %17 : vector<8x1xf32>
    %cst_7 = arith.constant 0.000000e+00 : f32
    %20 = vector.broadcast %cst_7 : f32 to vector<8x1xf32>
    %21 = arith.subf %20, %9 : vector<8x1xf32>
    %22 = arith.divf %21, %17 : vector<8x1xf32>
    %cst_8 = arith.constant -1.000000e+04 : f32
    %cst_9 = arith.constant 1.000000e+04 : f32
    %23 = vector.broadcast %cst_8 : f32 to vector<8x1xf32>
    %24 = arith.maximumf %23, %22 : vector<8x1xf32>
    %25 = vector.broadcast %cst_9 : f32 to vector<8x1xf32>
    %26 = arith.minimumf %25, %24 : vector<8x1xf32>
    %27 = math.roundeven %26 : vector<8x1xf32>
    %cst_10 = arith.constant 0.000000e+00 : f32
    %28 = vector.broadcast %cst_10 : f32 to vector<8x1xf32>
    %29 = arith.subf %28, %27 : vector<8x1xf32>
    %30 = arith.subf %7, %27 : vector<8x1xf32>
    %31 = vector.broadcast %19 : vector<8x1xf32> to vector<8x128xf32>
    %32 = arith.mulf %0, %31 : vector<8x128xf32>
    %33 = math.roundeven %32 : vector<8x128xf32>
    %34 = vector.broadcast %29 : vector<8x1xf32> to vector<8x128xf32>
    %35 = arith.maximumf %34, %33 : vector<8x128xf32>
    %36 = vector.broadcast %30 : vector<8x1xf32> to vector<8x128xf32>
    %37 = arith.minimumf %36, %35 : vector<8x128xf32>
    %38 = vector.broadcast %17 : vector<8x1xf32> to vector<8x128xf32>
    %39 = arith.mulf %37, %38 : vector<8x128xf32>
    %c0_11 = arith.constant 0 : index
    %c0_12 = arith.constant 0 : index
    %40 = vector.load %arg3[%c0_11, %c0_12] : memref<8x128xf32, #tpu.memory_space<vmem>>, vector<8x128xf32>
    tpu.vector_store %arg3[%c0_11, %c0_12], %39 {strides = array<i32>} : memref<8x128xf32, #tpu.memory_space<vmem>>, vector<8x128xf32>,
    return
  }
  func.func @transform_0(%arg0: i32) -> (i32, i32) {
    %c0_i32 = arith.constant 0 : i32
    %c0_i32_0 = arith.constant 0 : i32
    return %arg0, %c0_i32 : i32, i32
  }
  func.func @transform_1(%arg0: i32) -> (i32, i32) {
    %c0_i32 = arith.constant 0 : i32
    %c0_i32_0 = arith.constant 0 : i32
    %c0_i32_1 = arith.constant 0 : i32
    return %c0_i32, %c0_i32_0 : i32, i32
  }
  func.func @transform_2(%arg0: i32) -> (i32, i32) {
    %c0_i32 = arith.constant 0 : i32
    %c0_i32_0 = arith.constant 0 : i32
    return %arg0, %c0_i32 : i32, i32
  }
}

</mosaic_0001>

<bundles_post_ra>
// kernel: tpu_custom_call.1
= control target key start
LH: loop header
LB: loop body
LE: loop exit
PB: predicated region body
PF: predicated region fallthrough
CT: control target
= control target key end

     0   :  { %7 = vsyncpa [#allocation3], 0  ;;  %s512_s0 = inlined_call_operand.vmem [shape: f32[16,128], index: 0, kind: input, shape index: {}]   ;;  %s513_s1 = inlined_call_operand.vmem [shape: f32[16,1], index: 1, kind: input, shape index: {}]   ;;  %s514_s2 = inlined_call_operand.hbm [shape: f32[16,128], index: 2, kind: output, shape index: {}]  }
   0x1   :  { %9 = vsyncpa [#allocation3 + $0x1], 0  ;;  %s408_s9 = smov 0   ;;  %s410_s10 = smov 0  }
   0x2   :  { %s412_s11 = smov 0   ;;  %s414_s12 = smov 0  }
   0x3 LB: > { %s429_s13 = sadd.s32 4294967295, %s389_s12   ;;  %s264_s14 = sadd.s32 4294967294, %s389_s12   ;;  %s389_s12 = sphi %s414_s12, %s520_s12   ;;  %s385_s11 = sphi %s412_s11, %s519_s11   ;;  %s381_s10 = sphi %s410_s10, %s518_s10   ;;  %s377_s9 = sphi %s408_s9, %s517_s9  }
   0x4   : > { %s433_s15 = sadd.s32 1, %s389_s12   ;;  %s69_s16 = sadd.s32 1, %s385_s11 }
   0x5   : > { %s66_s17 = ssub.s32 %s389_s12, %s433_s15  ;;  %p79_p0 = scmp.ne.s32.totalorder %s385_s11, %s381_s10 }
   0x6   : > { %p67_p1 = scmp.eq.s32.totalorder %s66_s17, 0  ;;  %p80_p2 = scmp.eq.s32.totalorder %s429_s13, 1 }
   0x7   : > { %p85_p3 = scmp.ne.s32.totalorder %s381_s10, %s377_s9  ;;  %p86_p4 = scmp.eq.s32.totalorder %s264_s14, 1 }
   0x8   : > { %s444_s18 = scalar_select %p67_p1, %s385_s11, %s69_s16  }
   0x9   : > { %p446_p5 = por %p80_p2, %p79_p0  ;;  %p450_p6 = por %p86_p4, %p85_p3 }
   0xa   : > { %p267_p7 = scmp.ge.s32.totalorder %s389_s12, 1  ;;  %p114_p8 = scmp.lt.s32.totalorder %s389_s12, 3 }
   0xc   : > { %p115_p9 = pnand %p267_p7, %p114_p8 }
   0xd   : > { %p135_p10 = scmp.lt.s32.totalorder (!%p115_p9), %s429_s13, 1  ;;  %v391_v1 = vmov (!%p115_p9), 0   ;;  %s270_s26 = sshll.u32 (!%p115_p9), %s429_s13, 3 }
   0xe   : > { %118 = sbr.rel (%p115_p9) target bundleno = 347 (0x15b), region = 28  ;;  %319 = vset.pattern.permute.xlu1 (!%p115_p9), %v391_v1  ;;  %320 = vset.pattern.permute.xlu0 (!%p115_p9), %v391_v1  ;;  %s141_s29 = scalar_lea.vmem (!%p115_p9), %s513_s1, %s270_s26 }
   0xf   : > { %v142_v2 = vld [vmem:[%s141_s29] sm:$0xff] (!%p115_p9)  ;;  %s132_s30 = sand.u32 (!%p115_p9), 1, %s381_s10   ;;  %s274_s4 = sshll.u32 (!%p115_p9), %s429_s13, 7 }
  0x10   : > { %321 = vpow2.f32 (!%p115_p9), %v142_v2  ;;  %s268_s3 = sshll.u32 (!%p115_p9), %s132_s30, 3  ;;  %s470_s14 = scalar_lea.hbm (!%p115_p9), %s514_s2, %s274_s4 }
  0x11   : > { %s134_s5 = scalar_lea.vmem (!%p115_p9), [#allocation2], %s268_s3  ;;  %s190_s16 = scalar_lea.sflag (!%p115_p9), [#allocation3], %s132_s30 }
  0x12   : > { %s203_s6 = sshll.u32 (!%p115_p9), %s134_s5, 4  ;;  %s472_s6 = int_to_ptr.vmem [resolvable:$true] %s203_s6 }
  0x13   : > { %s327_s17 = scalar_lea.vmem (!%p115_p9), %s472_s6, 128 }
  0x14   : > { %p328_p11 = scmp.ne.s32.totalorder (!%p115_p9), %s472_s6, %s327_s17 }
  0x15   : > { %s136_s21 = scalar_select %p135_p10, %s429_s13, 1 }
  0x16   : > { %p329_p12 = pnand %p328_p11, %p446_p5  ;;  %s392_s13 = smov [#allocation2]  }
  0x17   : > { %s269_s22 = sshll.u32 %s136_s21, 3  ;;  %s331_s21 = sshll.u32 %s392_s13, 4  ;;  %s332_s21 = int_to_ptr.vmem [resolvable:$false] %s331_s21 }
  0x18   : > { %s138_s25 = scalar_lea.vmem %s512_s0, %s269_s22  ;;  %p330_p13 = pneg %p329_p12 }
  0x19   : > { %v139_v0 = vld [vmem:[%s138_s25] sm:$0xff]  ;;  %s333_s22 = scalar_lea.vmem %s332_s21, 256  ;;  %p334_p0 = scmp.lt.s32.totalorder %s472_s6, %s332_s21 }
  0x1a   : > { %145 = vmin.xlane.f32.xlu0 %v139_v0  ;;  %v322_v3 = vpop.eup %321  ;;  %p335_p1 = scmp.lt.s32.totalorder %s333_s22, %s327_s17 }
  0x1b   : > { %v271_v4 = vadd.f32 -1.0, %v322_v3 }
  0x1c   : > { %p336_p2 = por %p335_p1, %p334_p0 }
  0x1d   : > { %323 = vrcp.f32 %v271_v4 }
  0x1e   : > { %147 = vmax.xlane.f32.xlu0 %v139_v0  ;;  %p337_p3 = pnand %p336_p2, %p330_p13 }
  0x27   : > { %v324_v6 = vpop.eup %323 }
  0xa7   : > { %v146_v5 = vpop.xlane.xlu0 %145 }
  0xa8   : > { %v156_v12 = vsub.f32 0.0, %v146_v5 }
  0xab   : > { %v148_v7 = vpop.xlane.xlu0 %147 }
  0xac   : > { %v149_v8 = vsub.f32 %v148_v7, %v146_v5 }
  0xae   : > { %v151_v9 = vmul.f32 %v324_v6, %v149_v8 }
  0xb0   : > { %v152_v10 = vmax.f32 %v151_v9, 1e-05 }
  0xb2   : > { %v153_v11 = vmin.f32 %v152_v10, 10000.0 }
  0xb4   : > { %325 = vrcp.f32 %v153_v11 }
  0xbe   : > { %v326_v13 = vpop.eup %325 }
  0xbf   : > { %165 = vperm.xlu1 %319, %v326_v13   ;;  %v157_v14 = vmul.f32 %v326_v13, %v156_v12 }
  0xc1   : > { %v272_v15 = vclamps-f32 %v157_v14, 10000.0 }
  0xc3   : > { %v277_v16 = vround.rtne.f32 %v272_v15 }
  0xc5   : > { %v162_v17 = vsub.f32 %v271_v4, %v277_v16  ;;  %v161_v18 = vsub.f32 0.0, %v277_v16 }
  0xc7   : > { %178 = vperm.xlu0 %320, %v162_v17   ;;  %172 = vperm.xlu1 %319, %v161_v18  }
  0xcb   : > { %184 = vperm.xlu1 %319, %v153_v11  }
 0x13e   : > { %v166_v19 = vpop.permute.xlu1 %165 }
 0x13f   : > { %v168_v20 = vmul.f32 %v166_v19, %v139_v0 }
 0x141   : > { %v278_v21 = vround.rtne.f32 %v168_v20 }
 0x146   : > { %v173_v22 = vpop.permute.xlu1 %172  ;;  %v179_v24 = vpop.permute.xlu0 %178 }
 0x147   : > { %v175_v23 = vmax.f32 %v173_v22, %v278_v21 }
 0x149   : > { %v181_v25 = vmin.f32 %v179_v24, %v175_v23 }
 0x14a   : > { %v185_v26 = vpop.permute.xlu1 %184 }
 0x14b   : > { %v187_v27 = vmul.f32 %v185_v26, %v181_v25 }
 0x14d   : > { %188 = vst [vmem:[%s134_s5] sm:$0xff] %v187_v27 }
 0x14e   : > { %340 = shalt.err (!%p337_p3)
}
 0x14f   : > { %s341_s23 = scalar_lea.hbm %s470_s14, 128  ;;  %s345_s26 = scalar_lea.hbm %s514_s2, 256 }
 0x150   : > { %p342_p4 = scmp.ne.s32.totalorder %s470_s14, %s341_s23  ;;  %p346_p9 = scmp.lt.u32.totalorder %s470_s14, %s514_s2 }
 0x151   : > { %p347_p10 = scmp.lt.u32.totalorder %s345_s26, %s341_s23  ;;  %p349_p12 = scmp.lt.u32.totalorder %s341_s23, %s470_s14 }
 0x152   : > { %p343_p7 = pnand %p342_p4, %p446_p5 }
 0x153   : > { %p348_p11 = por %p347_p10, %p346_p9 }
 0x154   : > { %p344_p8 = pneg %p343_p7 }
 0x155   : > { %p350_p13 = por %p349_p12, %p348_p11 }
 0x157   : > { %p351_p0 = pnand %p350_p13, %p344_p8 }
 0x159   : > { %354 = shalt.err (!%p351_p0)
}
 0x15a   : > { %279 = dma.vmem_to_hbm [thread:$0]  (%p446_p5), %s472_s6, 128, %s470_s14, %s190_s16  }
 0x15b PF: > { %p285_p1 = scmp.ge.s32.totalorder %s389_s12, 2  ;;  %s215_s29 = sand.u32 1, %s377_s9  }
 0x15c   : > { %s216_s30 = scalar_lea.sflag [#allocation3], %s215_s29 }
 0x15d   : > { %p282_p2 = pnand %p285_p1, %p450_p6 }
 0x15f   : > { %372 = dma.done.wait (!%p282_p2), %s216_s30, 128  }
 0x160   : > { %374 = vsyncadd (!%p282_p2), %s216_s30, 4294967168  ;;  %p12_p3 = scmp.ge.s32.totalorder %s433_s15, 4   ;;  %s517_s9 = smov %s381_s10 }
 0x161   : > { %s518_s10 = smov %s385_s11  ;;  %s519_s11 = smov %s444_s18 }
 0x162   : > { %s520_s12 = smov %s433_s15  ;;  %14 = sbr.rel (!%p12_p3) target bundleno = 3 (0x3), region = 64 }
 0x169   :  { %221 = vsyncpa [#allocation3], 1 }
 0x16a   :  { %223 = vsyncpa [#allocation3 + $0x1], 1 }

</bundles_post_ra>
